<compile_context>
chip_gen: v7x
topology: tpu7x:2x2x1
jax: 0.10.0
libtpu: 0.0.40
codegen_flags: <defaults>
</compile_context>

<pallas_src>
import jax
import jax.numpy as jnp
import numpy as np
from jax.experimental import pallas as pl
from jax.experimental.pallas import tpu as pltpu


# ---------------------------------------------------------------------------
# Pure-JAX reference (original concat-pad formulation) — used only for the
# correctness self-test; the kernel below uses an independent roll-based
# formulation of the same math.
# ---------------------------------------------------------------------------
def _dot_loss_2d_ref(img, ex, ey):
    """Reference DotLoss math for one (H, W) float32 image + vector fields."""
    H, W = img.shape

    def zero_pad(a):
        zr = jnp.zeros((1, W), a.dtype)
        a = jnp.concatenate([zr, a, zr], axis=0)          # (H+2, W)
        zc = jnp.zeros((H + 2, 1), a.dtype)
        return jnp.concatenate([zc, a, zc], axis=1)       # (H+2, W+2)

    def edge_pad(a):
        a = jnp.concatenate([a[0:1, :], a, a[H - 1:H, :]], axis=0)
        return jnp.concatenate([a[:, 0:1], a, a[:, W - 1:W]], axis=1)

    def win(p, i, j):
        return p[i:i + H, j:j + W]

    pz = zero_pad(img)
    # F.conv2d is cross-correlation; sobel_x = [[1,0,-1],[2,0,-2],[1,0,-1]]
    dx = (win(pz, 0, 0) - win(pz, 0, 2)
          + 2.0 * win(pz, 1, 0) - 2.0 * win(pz, 1, 2)
          + win(pz, 2, 0) - win(pz, 2, 2))
    # sobel_y = sobel_x.T;  dImgDy = -conv(img, sobel_y)
    dy = -(win(pz, 0, 0) + 2.0 * win(pz, 0, 1) + win(pz, 0, 2)
           - win(pz, 2, 0) - 2.0 * win(pz, 2, 1) - win(pz, 2, 2))

    def box3(a):
        p = edge_pad(a)   # replicate pad by 1, then 3x3 mean, stride 1
        s = (win(p, 0, 0) + win(p, 0, 1) + win(p, 0, 2)
             + win(p, 1, 0) + win(p, 1, 1) + win(p, 1, 2)
             + win(p, 2, 0) + win(p, 2, 1) + win(p, 2, 2))
        return s * (1.0 / 9.0)

    dx_p = box3(dx)
    dy_p = box3(dy)

    norm_img = jnp.sqrt(dx_p * dx_p + dy_p * dy_p)
    dxn = dx_p / norm_img
    dyn = dy_p / norm_img
    norm_e = jnp.sqrt(ex * ex + ey * ey)
    exn = ex / norm_e
    eyn = ey / norm_e
    idl = jnp.abs(dxn * exn + dyn * eyn)
    return idl, dx_p, dy_p


# ---------------------------------------------------------------------------
# Pallas kernel: one batch element per grid step, roll-based stencils.
# ---------------------------------------------------------------------------
def _dot_loss_kernel(img_ref, ex_ref, ey_ref,
                     dot_ref, idl_ref, dx_ref, dy_ref):
    img = img_ref[0]          # (H, W) float32
    ex = ex_ref[0]
    ey = ey_ref[0]
    H, W = img.shape

    # Boundary masks — built once per tile and reused (JAX does not CSE
    # broadcast_in_dim; hoisting keeps VALU / vreg pressure down).
    ri = jax.lax.broadcasted_iota(jnp.int32, (H, W), 0)
    ci = jax.lax.broadcasted_iota(jnp.int32, (H, W), 1)
    has_up = ri > 0            # row i-1 exists
    has_dn = ri < H - 1        # row i+1 exists
    has_lf = ci > 0            # col j-1 exists
    has_rt = ci < W - 1        # col j+1 exists
    zero = jnp.zeros_like(img)

    def sh(x, off, axis):
        # result[i] = x[i + off] along `axis` (circular; wrap masked by caller)
        return pltpu.roll(x, shift=(-off) % x.shape[axis], axis=axis)

    # ---- Sobel, zero padding, separable ([1,2,1] ⊗ [1,0,-1]) ---------------
    v = (jnp.where(has_up, sh(img, -1, 0), zero) + 2.0 * img
         + jnp.where(has_dn, sh(img, +1, 0), zero))        # vertical [1,2,1]
    h = (jnp.where(has_lf, sh(img, -1, 1), zero) + 2.0 * img
         + jnp.where(has_rt, sh(img, +1, 1), zero))        # horizontal [1,2,1]
    # dImgDx =  conv2d(img, sobel_x) :  v[:, j-1] - v[:, j+1]
    dx = (jnp.where(has_lf, sh(v, -1, 1), zero)
          - jnp.where(has_rt, sh(v, +1, 1), zero))
    # dImgDy = -conv2d(img, sobel_y) :  h[i+1, :] - h[i-1, :]
    dy = (jnp.where(has_dn, sh(h, +1, 0), zero)
          - jnp.where(has_up, sh(h, -1, 0), zero))

    # ---- 3x3 mean, replicate padding, separable ----------------------------
    def box3(a):
        r = (jnp.where(has_up, sh(a, -1, 0), a) + a
             + jnp.where(has_dn, sh(a, +1, 0), a))
        c = (jnp.where(has_lf, sh(r, -1, 1), r) + r
             + jnp.where(has_rt, sh(r, +1, 1), r))
        return c * (1.0 / 9.0)

    dx_p = box3(dx)
    dy_p = box3(dy)

    # ---- fused normalisation + |dot| ---------------------------------------
    # |dx_n*ex_n + dy_n*ey_n| == |dx_p*ex + dy_p*ey| / (||grad|| * ||e||)
    inv_norms = jax.lax.rsqrt((dx_p * dx_p + dy_p * dy_p) * (ex * ex + ey * ey))
    idl = jnp.abs(dx_p * ex + dy_p * ey) * inv_norms

    idl_ref[0] = idl
    dx_ref[0] = dx_p
    dy_ref[0] = dy_p

    s = jnp.sum(idl, axis=1, keepdims=True)     # (H, 1)
    s = jnp.sum(s, axis=0, keepdims=True)       # (1, 1)
    dot_ref[...] = (s * (1.0 / (H * W)))[None]  # (1, 1, 1)


# ---------------------------------------------------------------------------
# Glue: PyTorch-style bilinear resize (align_corners=False).
# TODO(synk): F.interpolate stays in plain JAX (data-dependent gather; not
#             the hot path of this loss).
# ---------------------------------------------------------------------------
def _bilinear_resize_like_torch(x, out_h, out_w):
    n, c, in_h, in_w = x.shape
    if (in_h, in_w) == (out_h, out_w):
        return x

    def src_idx(out_size, in_size):
        scale = in_size / out_size
        s = (jnp.arange(out_size, dtype=jnp.float32) + 0.5) * scale - 0.5
        s = jnp.maximum(s, 0.0)
        i0 = jnp.floor(s).astype(jnp.int32)
        i0 = jnp.minimum(i0, in_size - 1)
        i1 = jnp.minimum(i0 + 1, in_size - 1)
        w1 = s - i0.astype(jnp.float32)
        w0 = 1.0 - w1
        return i0, i1, w0, w1

    y0, y1, wy0, wy1 = src_idx(out_h, in_h)
    x0, x1, wx0, wx1 = src_idx(out_w, in_w)

    r0 = x[:, :, y0, :]
    r1 = x[:, :, y1, :]
    rows = r0 * wy0[None, None, :, None] + r1 * wy1[None, None, :, None]
    c0 = rows[:, :, :, x0]
    c1 = rows[:, :, :, x1]
    return c0 * wx0[None, None, None, :] + c1 * wx1[None, None, None, :]


# ---------------------------------------------------------------------------
# Wrapper (mirrors DotLoss.forward).
# ---------------------------------------------------------------------------
def dot_loss_pallas(img, ex, ey):
    assert img.ndim == 4 and ex.ndim == 4 and ey.ndim == 4
    n, c, H, W = img.shape
    assert c == 1, "DotLoss Sobel kernels expect a single channel"
    assert ex.shape[1] == 1 and ey.shape[1] == 1
    # Roll-based stencils + unmasked (lane-dense) stores want native tiling.
    assert H % 8 == 0 and W % 128 == 0, (
        "dot_loss_pallas expects H % 8 == 0 and W % 128 == 0 "
        "(TPU sublane/lane-aligned layout)")

    ex_i = _bilinear_resize_like_torch(ex.astype(jnp.float32), H, W)
    ey_i = _bilinear_resize_like_torch(ey.astype(jnp.float32), H, W)

    img_s = img[:, 0].astype(jnp.float32)   # (N, H, W)
    ex_s = ex_i[:, 0]
    ey_s = ey_i[:, 0]

    img_spec = pl.BlockSpec((1, H, W), lambda b: (b, 0, 0))

    out_shapes = (
        jax.ShapeDtypeStruct((n, 1, 1), jnp.float32),   # dot_loss (per image)
        jax.ShapeDtypeStruct((n, H, W), jnp.float32),   # img_dot_loss
        jax.ShapeDtypeStruct((n, H, W), jnp.float32),   # dImgDx (post avg-pool)
        jax.ShapeDtypeStruct((n, H, W), jnp.float32),   # dImgDy (post avg-pool)
    )

    # 3 inputs + 3 full-size outputs double-buffered + ~2 dozen tile temps.
    # TODO(synk): for very large images on v7x (64 MiB VMEM/TC), tile along H
    #             with a 2-row halo and per-tile partial sums instead of
    #             whole-frame blocks.
    block_bytes = H * W * 4
    vmem_limit = int(min(max(36 * block_bytes, 16 * 1024 * 1024),
                         100 * 1024 * 1024))

    dot, idl, dxp, dyp = pl.pallas_call(
        _dot_loss_kernel,
        out_shape=out_shapes,
        grid=(n,),
        in_specs=[img_spec, img_spec, img_spec],
        out_specs=(
            pl.BlockSpec((1, 1, 1), lambda b: (b, 0, 0)),
            img_spec, img_spec, img_spec,
        ),
        compiler_params=pltpu.CompilerParams(
            dimension_semantics=("parallel",),
            vmem_limit_bytes=vmem_limit),
    )(img_s, ex_s, ey_s)

    dot_loss = dot[:, :, 0]            # (N, 1)
    img_dot_loss = idl[:, None]        # (N, 1, H, W)
    dImgDx = dxp[:, None]
    dImgDy = dyp[:, None]
    return dot_loss, img_dot_loss, (dImgDx, dImgDy)


if __name__ == "__main__":
    key = jax.random.PRNGKey(0)
    k1, k2, k3 = jax.random.split(key, 3)
    # Lane-dense spatial size (W multiple of 128, H multiple of 8).
    N, H, W = 2, 32, 128
    img = jax.random.normal(k1, (N, 1, H, W), dtype=jnp.float32)
    ex = jax.random.normal(k2, (N, 1, 16, 64), dtype=jnp.float32)
    ey = jax.random.normal(k3, (N, 1, 16, 64), dtype=jnp.float32)

    dot_loss, img_dot_loss, (dImgDx, dImgDy) = dot_loss_pallas(img, ex, ey)
    jax.block_until_ready((dot_loss, img_dot_loss, dImgDx, dImgDy))

    # Pure-JAX reference (original concat-pad math, vmapped over batch).
    ex_i = _bilinear_resize_like_torch(ex, H, W)[:, 0]
    ey_i = _bilinear_resize_like_torch(ey, H, W)[:, 0]
    ref_idl, ref_dx, ref_dy = jax.vmap(_dot_loss_2d_ref)(img[:, 0], ex_i, ey_i)
    ref_dot = ref_idl.reshape(N, -1).mean(axis=1, keepdims=True)

    np.testing.assert_allclose(np.asarray(img_dot_loss[:, 0]), np.asarray(ref_idl),
                               rtol=1e-4, atol=1e-4)
    np.testing.assert_allclose(np.asarray(dImgDx[:, 0]), np.asarray(ref_dx),
                               rtol=1e-4, atol=1e-4)
    np.testing.assert_allclose(np.asarray(dImgDy[:, 0]), np.asarray(ref_dy),
                               rtol=1e-4, atol=1e-4)
    np.testing.assert_allclose(np.asarray(dot_loss), np.asarray(ref_dot),
                               rtol=1e-4, atol=1e-4)

    print("KERNEL_OK")
</pallas_src>

<mosaic_0001>
module attributes {stable_mosaic.version = 11 : i64} {
  func.func @_dot_loss_kernel(%arg0: i32, %arg1: memref<1x32x128xf32, #tpu.memory_space<vmem>>, %arg2: memref<1x32x128xf32, #tpu.memory_space<vmem>>, %arg3: memref<1x32x128xf32, #tpu.memory_space<vmem>>, %arg4: memref<1x1x1xf32, #tpu.memory_space<vmem>>, %arg5: memref<1x32x128xf32, #tpu.memory_space<vmem>>, %arg6: memref<1x32x128xf32, #tpu.memory_space<vmem>>, %arg7: memref<1x32x128xf32, #tpu.memory_space<vmem>>) attributes {dimension_semantics = [#tpu.dimension_semantics<parallel>], iteration_bounds = array<i64: 2>, scalar_prefetch = 0 : i64, scratch_operands = 0 : i64, tpu.core_type = #tpu.core_type<tc>, window_params = [{transform_indices = @transform_0, window_bounds = array<i64: 1, 32, 128>}, {transform_indices = @transform_1, window_bounds = array<i64: 1, 32, 128>}, {transform_indices = @transform_2, window_bounds = array<i64: 1, 32, 128>}, {transform_indices = @transform_3, window_bounds = array<i64: 1, 1, 1>}, {transform_indices = @transform_4, window_bounds = array<i64: 1, 32, 128>}, {transform_indices = @transform_5, window_bounds = array<i64: 1, 32, 128>}, {transform_indices = @transform_6, window_bounds = array<i64: 1, 32, 128>}]} {
    %c0 = arith.constant 0 : index
    %c0_0 = arith.constant 0 : index
    %c0_1 = arith.constant 0 : index
    %0 = vector.load %arg1[%c0, %c0_0, %c0_1] : memref<1x32x128xf32, #tpu.memory_space<vmem>>, vector<1x32x128xf32>
    %1 = vector.shape_cast %0 : vector<1x32x128xf32> to vector<32x128xf32>
    %c0_2 = arith.constant 0 : index
    %c0_3 = arith.constant 0 : index
    %c0_4 = arith.constant 0 : index
    %2 = vector.load %arg2[%c0_2, %c0_3, %c0_4] : memref<1x32x128xf32, #tpu.memory_space<vmem>>, vector<1x32x128xf32>
    %3 = vector.shape_cast %2 : vector<1x32x128xf32> to vector<32x128xf32>
    %c0_5 = arith.constant 0 : index
    %c0_6 = arith.constant 0 : index
    %c0_7 = arith.constant 0 : index
    %4 = vector.load %arg3[%c0_5, %c0_6, %c0_7] : memref<1x32x128xf32, #tpu.memory_space<vmem>>, vector<1x32x128xf32>
    %5 = vector.shape_cast %4 : vector<1x32x128xf32> to vector<32x128xf32>
    %6 = tpu.iota {dimensions = array<i32: 0>} : vector<32x128xi32>
    %7 = tpu.iota {dimensions = array<i32: 1>} : vector<32x128xi32>
    %c0_i32 = arith.constant 0 : i32
    %8 = vector.broadcast %c0_i32 : i32 to vector<32x128xi32>
    %9 = arith.cmpi sgt, %6, %8 : vector<32x128xi32>
    %c31_i32 = arith.constant 31 : i32
    %10 = vector.broadcast %c31_i32 : i32 to vector<32x128xi32>
    %11 = arith.cmpi slt, %6, %10 : vector<32x128xi32>
    %c0_i32_8 = arith.constant 0 : i32
    %12 = vector.broadcast %c0_i32_8 : i32 to vector<32x128xi32>
    %13 = arith.cmpi sgt, %7, %12 : vector<32x128xi32>
    %c127_i32 = arith.constant 127 : i32
    %14 = vector.broadcast %c127_i32 : i32 to vector<32x128xi32>
    %15 = arith.cmpi slt, %7, %14 : vector<32x128xi32>
    %cst = arith.constant 0.000000e+00 : f32
    %16 = vector.broadcast %cst : f32 to vector<32x128xf32>
    %c1_i32 = arith.constant 1 : i32
    %17 = tpu.dynamic_rotate %1 by %c1_i32 dim 0 : vector<32x128xf32>, i32 -> vector<32x128xf32>
    %18 = arith.select %9, %17, %16 : vector<32x128xi1>, vector<32x128xf32>
    %cst_9 = arith.constant 2.000000e+00 : f32
    %19 = vector.broadcast %cst_9 : f32 to vector<32x128xf32>
    %20 = arith.mulf %19, %1 : vector<32x128xf32>
    %21 = arith.addf %18, %20 : vector<32x128xf32>
    %c31_i32_10 = arith.constant 31 : i32
    %22 = tpu.dynamic_rotate %1 by %c31_i32_10 dim 0 : vector<32x128xf32>, i32 -> vector<32x128xf32>
    %23 = arith.select %11, %22, %16 : vector<32x128xi1>, vector<32x128xf32>
    %24 = arith.addf %21, %23 : vector<32x128xf32>
    %c1_i32_11 = arith.constant 1 : i32
    %25 = tpu.dynamic_rotate %1 by %c1_i32_11 dim 1 : vector<32x128xf32>, i32 -> vector<32x128xf32>
    %26 = arith.select %13, %25, %16 : vector<32x128xi1>, vector<32x128xf32>
    %cst_12 = arith.constant 2.000000e+00 : f32
    %27 = vector.broadcast %cst_12 : f32 to vector<32x128xf32>
    %28 = arith.mulf %27, %1 : vector<32x128xf32>
    %29 = arith.addf %26, %28 : vector<32x128xf32>
    %c127_i32_13 = arith.constant 127 : i32
    %30 = tpu.dynamic_rotate %1 by %c127_i32_13 dim 1 : vector<32x128xf32>, i32 -> vector<32x128xf32>
    %31 = arith.select %15, %30, %16 : vector<32x128xi1>, vector<32x128xf32>
    %32 = arith.addf %29, %31 : vector<32x128xf32>
    %c1_i32_14 = arith.constant 1 : i32
    %33 = tpu.dynamic_rotate %24 by %c1_i32_14 dim 1 : vector<32x128xf32>, i32 -> vector<32x128xf32>
    %34 = arith.select %13, %33, %16 : vector<32x128xi1>, vector<32x128xf32>
    %c127_i32_15 = arith.constant 127 : i32
    %35 = tpu.dynamic_rotate %24 by %c127_i32_15 dim 1 : vector<32x128xf32>, i32 -> vector<32x128xf32>
    %36 = arith.select %15, %35, %16 : vector<32x128xi1>, vector<32x128xf32>
    %37 = arith.subf %34, %36 : vector<32x128xf32>
    %c31_i32_16 = arith.constant 31 : i32
    %38 = tpu.dynamic_rotate %32 by %c31_i32_16 dim 0 : vector<32x128xf32>, i32 -> vector<32x128xf32>
    %39 = arith.select %11, %38, %16 : vector<32x128xi1>, vector<32x128xf32>
    %c1_i32_17 = arith.constant 1 : i32
    %40 = tpu.dynamic_rotate %32 by %c1_i32_17 dim 0 : vector<32x128xf32>, i32 -> vector<32x128xf32>
    %41 = arith.select %9, %40, %16 : vector<32x128xi1>, vector<32x128xf32>
    %42 = arith.subf %39, %41 : vector<32x128xf32>
    %c1_i32_18 = arith.constant 1 : i32
    %43 = tpu.dynamic_rotate %37 by %c1_i32_18 dim 0 : vector<32x128xf32>, i32 -> vector<32x128xf32>
    %44 = arith.select %9, %43, %37 : vector<32x128xi1>, vector<32x128xf32>
    %45 = arith.addf %44, %37 : vector<32x128xf32>
    %c31_i32_19 = arith.constant 31 : i32
    %46 = tpu.dynamic_rotate %37 by %c31_i32_19 dim 0 : vector<32x128xf32>, i32 -> vector<32x128xf32>
    %47 = arith.select %11, %46, %37 : vector<32x128xi1>, vector<32x128xf32>
    %48 = arith.addf %45, %47 : vector<32x128xf32>
    %c1_i32_20 = arith.constant 1 : i32
    %49 = tpu.dynamic_rotate %48 by %c1_i32_20 dim 1 : vector<32x128xf32>, i32 -> vector<32x128xf32>
    %50 = arith.select %13, %49, %48 : vector<32x128xi1>, vector<32x128xf32>
    %51 = arith.addf %50, %48 : vector<32x128xf32>
    %c127_i32_21 = arith.constant 127 : i32
    %52 = tpu.dynamic_rotate %48 by %c127_i32_21 dim 1 : vector<32x128xf32>, i32 -> vector<32x128xf32>
    %53 = arith.select %15, %52, %48 : vector<32x128xi1>, vector<32x128xf32>
    %54 = arith.addf %51, %53 : vector<32x128xf32>
    %cst_22 = arith.constant 0.111111112 : f32
    %55 = vector.broadcast %cst_22 : f32 to vector<32x128xf32>
    %56 = arith.mulf %54, %55 : vector<32x128xf32>
    %c1_i32_23 = arith.constant 1 : i32
    %57 = tpu.dynamic_rotate %42 by %c1_i32_23 dim 0 : vector<32x128xf32>, i32 -> vector<32x128xf32>
    %58 = arith.select %9, %57, %42 : vector<32x128xi1>, vector<32x128xf32>
    %59 = arith.addf %58, %42 : vector<32x128xf32>
    %c31_i32_24 = arith.constant 31 : i32
    %60 = tpu.dynamic_rotate %42 by %c31_i32_24 dim 0 : vector<32x128xf32>, i32 -> vector<32x128xf32>
    %61 = arith.select %11, %60, %42 : vector<32x128xi1>, vector<32x128xf32>
    %62 = arith.addf %59, %61 : vector<32x128xf32>
    %c1_i32_25 = arith.constant 1 : i32
    %63 = tpu.dynamic_rotate %62 by %c1_i32_25 dim 1 : vector<32x128xf32>, i32 -> vector<32x128xf32>
    %64 = arith.select %13, %63, %62 : vector<32x128xi1>, vector<32x128xf32>
    %65 = arith.addf %64, %62 : vector<32x128xf32>
    %c127_i32_26 = arith.constant 127 : i32
    %66 = tpu.dynamic_rotate %62 by %c127_i32_26 dim 1 : vector<32x128xf32>, i32 -> vector<32x128xf32>
    %67 = arith.select %15, %66, %62 : vector<32x128xi1>, vector<32x128xf32>
    %68 = arith.addf %65, %67 : vector<32x128xf32>
    %cst_27 = arith.constant 0.111111112 : f32
    %69 = vector.broadcast %cst_27 : f32 to vector<32x128xf32>
    %70 = arith.mulf %68, %69 : vector<32x128xf32>
    %71 = arith.mulf %56, %56 : vector<32x128xf32>
    %72 = arith.mulf %70, %70 : vector<32x128xf32>
    %73 = arith.addf %71, %72 : vector<32x128xf32>
    %74 = arith.mulf %3, %3 : vector<32x128xf32>
    %75 = arith.mulf %5, %5 : vector<32x128xf32>
    %76 = arith.addf %74, %75 : vector<32x128xf32>
    %77 = arith.mulf %73, %76 : vector<32x128xf32>
    %78 = math.rsqrt %77 : vector<32x128xf32>
    %79 = arith.mulf %56, %3 : vector<32x128xf32>
    %80 = arith.mulf %70, %5 : vector<32x128xf32>
    %81 = arith.addf %79, %80 : vector<32x128xf32>
    %82 = math.absf %81 : vector<32x128xf32>
    %83 = arith.mulf %82, %78 : vector<32x128xf32>
    %c0_28 = arith.constant 0 : index
    %c0_29 = arith.constant 0 : index
    %c0_30 = arith.constant 0 : index
    %84 = vector.load %arg5[%c0_28, %c0_29, %c0_30] : memref<1x32x128xf32, #tpu.memory_space<vmem>>, vector<1x32x128xf32>
    %85 = vector.shape_cast %84 : vector<1x32x128xf32> to vector<32x128xf32>
    %86 = vector.shape_cast %83 : vector<32x128xf32> to vector<1x32x128xf32>
    tpu.vector_store %arg5[%c0_28, %c0_29, %c0_30], %86 {strides = array<i32>} : memref<1x32x128xf32, #tpu.memory_space<vmem>>, vector<1x32x128xf32>,
    %c0_31 = arith.constant 0 : index
    %c0_32 = arith.constant 0 : index
    %c0_33 = arith.constant 0 : index
    %87 = vector.load %arg6[%c0_31, %c0_32, %c0_33] : memref<1x32x128xf32, #tpu.memory_space<vmem>>, vector<1x32x128xf32>
    %88 = vector.shape_cast %87 : vector<1x32x128xf32> to vector<32x128xf32>
    %89 = vector.shape_cast %56 : vector<32x128xf32> to vector<1x32x128xf32>
    tpu.vector_store %arg6[%c0_31, %c0_32, %c0_33], %89 {strides = array<i32>} : memref<1x32x128xf32, #tpu.memory_space<vmem>>, vector<1x32x128xf32>,
    %c0_34 = arith.constant 0 : index
    %c0_35 = arith.constant 0 : index
    %c0_36 = arith.constant 0 : index
    %90 = vector.load %arg7[%c0_34, %c0_35, %c0_36] : memref<1x32x128xf32, #tpu.memory_space<vmem>>, vector<1x32x128xf32>
    %91 = vector.shape_cast %90 : vector<1x32x128xf32> to vector<32x128xf32>
    %92 = vector.shape_cast %70 : vector<32x128xf32> to vector<1x32x128xf32>
    tpu.vector_store %arg7[%c0_34, %c0_35, %c0_36], %92 {strides = array<i32>} : memref<1x32x128xf32, #tpu.memory_space<vmem>>, vector<1x32x128xf32>,
    %cst_37 = arith.constant dense<0.000000e+00> : vector<32xf32>
    %93 = vector.multi_reduction <add>, %83, %cst_37 [1] : vector<32x128xf32> to vector<32xf32>
    %94 = vector.shape_cast %93 : vector<32xf32> to vector<32x1xf32>
    %cst_38 = arith.constant dense<0.000000e+00> : vector<1xf32>
    %95 = vector.multi_reduction <add>, %94, %cst_38 [0] : vector<32x1xf32> to vector<1xf32>
    %96 = vector.shape_cast %95 : vector<1xf32> to vector<1x1xf32>
    %cst_39 = arith.constant 2.44140625E-4 : f32
    %97 = vector.broadcast %cst_39 : f32 to vector<1x1xf32>
    %98 = arith.mulf %96, %97 : vector<1x1xf32>
    %99 = vector.shape_cast %98 : vector<1x1xf32> to vector<1x1x1xf32>
    %c0_40 = arith.constant 0 : index
    %c0_41 = arith.constant 0 : index
    %c0_42 = arith.constant 0 : index
    %100 = vector.load %arg4[%c0_40, %c0_41, %c0_42] : memref<1x1x1xf32, #tpu.memory_space<vmem>>, vector<1x1x1xf32>
    tpu.vector_store %arg4[%c0_40, %c0_41, %c0_42], %99 {strides = array<i32>} : memref<1x1x1xf32, #tpu.memory_space<vmem>>, vector<1x1x1xf32>,
    return
  }
  func.func @transform_0(%arg0: i32) -> (i32, i32, i32) {
    %c0_i32 = arith.constant 0 : i32
    %c0_i32_0 = arith.constant 0 : i32
    %c0_i32_1 = arith.constant 0 : i32
    return %arg0, %c0_i32, %c0_i32_0 : i32, i32, i32
  }
  func.func @transform_1(%arg0: i32) -> (i32, i32, i32) {
    %c0_i32 = arith.constant 0 : i32
    %c0_i32_0 = arith.constant 0 : i32
    %c0_i32_1 = arith.constant 0 : i32
    return %arg0, %c0_i32, %c0_i32_0 : i32, i32, i32
  }
  func.func @transform_2(%arg0: i32) -> (i32, i32, i32) {
    %c0_i32 = arith.constant 0 : i32
    %c0_i32_0 = arith.constant 0 : i32
    %c0_i32_1 = arith.constant 0 : i32
    return %arg0, %c0_i32, %c0_i32_0 : i32, i32, i32
  }
  func.func @transform_3(%arg0: i32) -> (i32, i32, i32) {
    %c0_i32 = arith.constant 0 : i32
    %c0_i32_0 = arith.constant 0 : i32
    %c0_i32_1 = arith.constant 0 : i32
    return %arg0, %c0_i32, %c0_i32_0 : i32, i32, i32
  }
  func.func @transform_4(%arg0: i32) -> (i32, i32, i32) {
    %c0_i32 = arith.constant 0 : i32
    %c0_i32_0 = arith.constant 0 : i32
    %c0_i32_1 = arith.constant 0 : i32
    return %arg0, %c0_i32, %c0_i32_0 : i32, i32, i32
  }
  func.func @transform_5(%arg0: i32) -> (i32, i32, i32) {
    %c0_i32 = arith.constant 0 : i32
    %c0_i32_0 = arith.constant 0 : i32
    %c0_i32_1 = arith.constant 0 : i32
    return %arg0, %c0_i32, %c0_i32_0 : i32, i32, i32
  }
  func.func @transform_6(%arg0: i32) -> (i32, i32, i32) {
    %c0_i32 = arith.constant 0 : i32
    %c0_i32_0 = arith.constant 0 : i32
    %c0_i32_1 = arith.constant 0 : i32
    return %arg0, %c0_i32, %c0_i32_0 : i32, i32, i32
  }
}

</mosaic_0001>

<bundles_post_ra>
// kernel: tpu_custom_call.1
= control target key start
LH: loop header
LB: loop body
LE: loop exit
PB: predicated region body
PF: predicated region fallthrough
CT: control target
= control target key end

     0   :  { %s2034_s0 = inlined_call_operand.hbm [shape: f32[2,32,128], index: 0, kind: input, shape index: {}]   ;;  %s2035_s1 = inlined_call_operand.hbm [shape: f32[2,32,128], index: 1, kind: input, shape index: {}]   ;;  %s2036_s2 = inlined_call_operand.hbm [shape: f32[2,32,128], index: 2, kind: input, shape index: {}]   ;;  %s2037_s3 = inlined_call_operand.vmem [shape: f32[2,1,1], index: 3, kind: output, shape index: {0}]   ;;  %s2038_s4 = inlined_call_operand.hbm [shape: f32[2,32,128], index: 4, kind: output, shape index: {1}]   ;;  %s2039_s5 = inlined_call_operand.hbm [shape: f32[2,32,128], index: 5, kind: output, shape index: {2}]   ;;  %s2040_s6 = inlined_call_operand.hbm [shape: f32[2,32,128], index: 6, kind: output, shape index: {3}]  }
   0x1   :  { %2051 = sst [smem:[#allocation18_spill]] %s2034_s0 }
   0x2   :  { %2052 = sst [smem:[#allocation19_spill]] %s2035_s1 }
   0x3   :  { %12 = vsyncpa [#allocation3], 0 }
   0x4   :  { %14 = vsyncpa [#allocation3 + $0x1], 0 }
   0x5   :  { %15 = vsyncpa [#allocation6], 0 }
   0x6   :  { %17 = vsyncpa [#allocation6 + $0x1], 0 }
   0x7   :  { %18 = vsyncpa [#allocation4], 0 }
   0x8   :  { %20 = vsyncpa [#allocation4 + $0x1], 0 }
   0x9   :  { %21 = vsyncpa [#allocation10], 0 }
   0xa   :  { %23 = vsyncpa [#allocation10 + $0x1], 0  ;;  %s1391_s21 = smov 0   ;;  %s1393_s22 = smov 0  }
   0xb   :  { %s1395_s23 = smov 0   ;;  %s1397_s24 = smov 0  }
   0xc LB: > { %s1412_s25 = sadd.s32 4294967295, %s1342_s24   ;;  %s2041_s26 = sadd.s32 4294967294, %s1342_s24   ;;  %s1342_s24 = sphi %s1397_s24, %s2073_s24   ;;  %s1338_s23 = sphi %s1395_s23, %s2077_s23   ;;  %s1334_s22 = sphi %s1393_s22, %s2076_s22   ;;  %s1330_s21 = sphi %s1391_s21, %s2075_s21  }
   0xd   : > { %s1416_s27 = sadd.s32 1, %s1342_s24   ;;  %s36_s28 = sadd.s32 1, %s1338_s23 }
   0xe   : > { %2053 = sst [smem:[#allocation16_spill]] %s1416_s27  ;;  %s33_s29 = ssub.s32 %s1342_s24, %s1416_s27 }
   0xf   : > { %p43_p0 = scmp.ne.s32.totalorder %s1338_s23, %s1334_s22  ;;  %p34_p1 = scmp.eq.s32.totalorder %s33_s29, 0 }
  0x10   : > { %p44_p2 = scmp.eq.s32.totalorder %s1342_s24, 0  ;;  %p49_p3 = scmp.ne.s32.totalorder %s1334_s22, %s1330_s21 }
  0x11   : > { %p50_p4 = scmp.eq.s32.totalorder %s1412_s25, 0  ;;  %p151_p7 = scmp.eq.s32.totalorder %s1412_s25, 1 }
  0x12   : > { %s1428_s30 = scalar_select %p34_p1, %s1338_s23, %s36_s28  }
  0x13   : > { %p45_p5 = por %p44_p2, %p43_p0  ;;  %p1430_p6 = por %p50_p4, %p49_p3 }
  0x14   : > { %2054 = sst [smem:[#allocation17_spill]] %s1428_s30  ;;  %p157_p8 = scmp.eq.s32.totalorder %s2041_s26, 1 }
  0x15   : > { %s2055_s7 = scalar_select %p1430_p6, 1, 0 }
  0x16   : > { %p1074_p10 = scmp.lt.s32.totalorder %s1342_s24, 2  ;;  %p1439_p11 = por %p151_p7, %p43_p0 }
  0x17   : > { %p1443_p12 = por %p157_p8, %p49_p3  ;;  %s2042_s10 = sand.u32 1, %s1338_s23  }
  0x18   : > { %s2056_s8 = scalar_select %p1439_p11, 1, 0 }
  0x19   : > { %s2057_s9 = scalar_select %p1443_p12, 1, 0 }
  0x1a   : > { %s1449_s11 = sshll.u32 %s1342_s24, 9  ;;  %s1453_s12 = sshll.u32 %s2042_s10, 5 }
  0x1b   : > { %p1455_p13 = pnand %p1074_p10, %p45_p5  ;;  %s250_s14 = sand.u32 1, %s1342_s24  }
  0x1c   : > { %s2059_s1 = sld [smem:[#allocation19_spill]]  ;;  %s254_s18 = scalar_lea.vmem [#allocation5], %s1453_s12 }
  0x1d   : > { %s261_s19 = sshll.u32 %s254_s18, 4  ;;  %s1470_s20 = scalar_lea.sflag [#allocation6], %s250_s14  ;;  %s1467_s19 = int_to_ptr.vmem [resolvable:$true] %s261_s19 }
  0x1e   : > { %p1476_p2 = pneg %p1455_p13 }
  0x22   : > { %s1464_s17 = scalar_lea.hbm %s2059_s1, %s1449_s11  ;;  %s1127_s18 = scalar_lea.hbm %s2059_s1, 1024 }
  0x23   : > { %s1122_s28 = scalar_lea.hbm %s1464_s17, 512  ;;  %p1128_p5 = scmp.lt.u32.totalorder %s1464_s17, %s2059_s1 }
  0x24   : > { %p1123_p1 = scmp.ne.s32.totalorder %s1464_s17, %s1122_s28  ;;  %p1129_p7 = scmp.lt.u32.totalorder %s1127_s18, %s1122_s28 }
  0x25   : > { %p1131_p10 = scmp.lt.u32.totalorder %s1122_s28, %s1464_s17 }
  0x26   : > { %p1125_p3 = pnand %p1476_p2, %p1123_p1  ;;  %p1130_p8 = por %p1129_p7, %p1128_p5 }
  0x28   : > { %p1126_p4 = pneg %p1125_p3  ;;  %p1132_p9 = por %p1131_p10, %p1130_p8 }
  0x2a   : > { %p1133_p0 = pnand %p1132_p9, %p1126_p4 }
  0x2c   : > { %1136 = shalt.err (!%p1133_p0)
}
  0x2d   : > { %s1137_s14 = scalar_lea.vmem %s1467_s19, 512  ;;  %s1344_s15 = smov [#allocation5]  }
  0x2e   : > { %p1138_p1 = scmp.ne.s32.totalorder %s1467_s19, %s1137_s14  ;;  %s1142_s16 = sshll.u32 %s1344_s15, 4  ;;  %s1143_s16 = int_to_ptr.vmem [resolvable:$false] %s1142_s16 }
  0x2f   : > { %s1144_s26 = scalar_lea.vmem %s1143_s16, 1024  ;;  %p1145_p11 = scmp.lt.s32.totalorder %s1467_s19, %s1143_s16 }
  0x30   : > { %p1140_p3 = pnand %p1138_p1, %p1476_p2  ;;  %p1146_p6 = scmp.lt.s32.totalorder %s1144_s26, %s1137_s14 }
  0x32   : > { %p1141_p12 = pneg %p1140_p3  ;;  %p1147_p5 = por %p1146_p6, %p1145_p11 }
  0x34   : > { %p1148_p7 = pnand %p1147_p5, %p1141_p12 }
  0x36   : > { %1151 = shalt.err (!%p1148_p7)
}
  0x37   : > { %s2045_s10 = smov 128   ;;  %s2047_s28 = smov 8  }
  0x38   : > { %1060 = dma.hbm_to_vmem [thread:$0]  (!%p1455_p13), %s1464_s17, 512, %s1467_s19, %s1470_s20, %s2045_s10, %s2045_s10, %s2047_s28  }
  0x39   : > { %p290_p6 = scmp.lt.s32.totalorder %s1342_s24, 3  ;;  %s2061_s0 = sld [smem:[#allocation18_spill]] }
  0x3a   : > { %p2062_p9 = scmp.ge.s32.totalorder %s1342_s24, 1  ;;  %s233_s26 = scalar_lea.vmem [#allocation2], %s1453_s12 }
  0x3b   : > { %s240_s1 = sshll.u32 %s233_s26, 4  ;;  %s2064_s17 = sand.u32 1, %s1338_s23   ;;  %s1517_s1 = int_to_ptr.vmem [resolvable:$true] %s240_s1 }
  0x3c   : > { %p1512_p11 = pnand %p2062_p9, %p290_p6  ;;  %s1521_s19 = scalar_lea.sflag [#allocation3], %s2064_s17 }
  0x3e   : > { %s2063_s16 = scalar_select %p1512_p11, 1, 0 }
  0x3f   : > { %s1508_s15 = scalar_lea.hbm %s2061_s0, %s1449_s11  ;;  %s1157_s28 = scalar_lea.hbm %s2061_s0, 1024 }
  0x40   : > { %s1152_s10 = scalar_lea.hbm %s1508_s15, 512  ;;  %p1158_p8 = scmp.lt.u32.totalorder %s1508_s15, %s2061_s0 }
  0x41   : > { %p1153_p12 = scmp.ne.s32.totalorder %s1508_s15, %s1152_s10  ;;  %p1159_p10 = scmp.lt.u32.totalorder %s1157_s28, %s1152_s10 }
  0x42   : > { %p1161_p3 = scmp.lt.u32.totalorder %s1152_s10, %s1508_s15 }
  0x43   : > { %p1155_p0 = pnand %p1153_p12, %p1476_p2  ;;  %p1160_p1 = por %p1159_p10, %p1158_p8 }
  0x45   : > { %p1156_p4 = pneg %p1155_p0  ;;  %p1162_p5 = por %p1161_p3, %p1160_p1 }
  0x47   : > { %p1163_p7 = pnand %p1162_p5, %p1156_p4 }
  0x49   : > { %1166 = shalt.err (!%p1163_p7)
}
  0x4a   : > { %s1167_s26 = scalar_lea.vmem %s1517_s1, 512  ;;  %s1347_s17 = smov [#allocation2]  }
  0x4b   : > { %p1168_p6 = scmp.ne.s32.totalorder %s1517_s1, %s1167_s26  ;;  %s1172_s18 = sshll.u32 %s1347_s17, 4  ;;  %s1173_s18 = int_to_ptr.vmem [resolvable:$false] %s1172_s18 }
  0x4c   : > { %s1174_s27 = scalar_lea.vmem %s1173_s18, 1024  ;;  %p1175_p0 = scmp.lt.s32.totalorder %s1517_s1, %s1173_s18 }
  0x4d   : > { %p1170_p9 = pnand %p1168_p6, %p1476_p2  ;;  %p1176_p11 = scmp.lt.s32.totalorder %s1174_s27, %s1167_s26 }
  0x4f   : > { %p1171_p12 = pneg %p1170_p9  ;;  %p1177_p8 = por %p1176_p11, %p1175_p0 }
  0x51   : > { %p1178_p10 = pnand %p1177_p8, %p1171_p12 }
  0x53   : > { %1181 = shalt.err (!%p1178_p10)
}
  0x54   : > { %s2065_s30 = smov 8   ;;  %s2066_s10 = smov 128  }
  0x55   : > { %1057 = dma.hbm_to_vmem [thread:$0]  (!%p1455_p13), %s1508_s15, 512, %s1517_s1, %s1521_s19, %s2066_s10, %s2066_s10, %s2065_s30  }
  0x56   : > { %s1552_s17 = scalar_lea.hbm %s2036_s2, %s1449_s11  ;;  %s275_s26 = scalar_lea.vmem [#allocation7], %s1453_s12 }
  0x57   : > { %s282_s18 = sshll.u32 %s275_s26, 4  ;;  %s1182_s27 = scalar_lea.hbm %s1552_s17, 512  ;;  %s1555_s18 = int_to_ptr.vmem [resolvable:$true] %s282_s18 }
  0x58   : > { %p1183_p11 = scmp.ne.s32.totalorder %s1552_s17, %s1182_s27  ;;  %s1187_s15 = scalar_lea.hbm %s2036_s2, 1024 }
  0x59   : > { %p1188_p3 = scmp.lt.u32.totalorder %s1552_s17, %s2036_s2  ;;  %p1189_p5 = scmp.lt.u32.totalorder %s1187_s15, %s1182_s27 }
  0x5a   : > { %p1185_p4 = pnand %p1183_p11, %p1476_p2  ;;  %p1191_p6 = scmp.lt.u32.totalorder %s1182_s27, %s1552_s17 }
  0x5b   : > { %p1190_p7 = por %p1189_p5, %p1188_p3 }
  0x5c   : > { %p1186_p1 = pneg %p1185_p4 }
  0x5d   : > { %p1192_p9 = por %p1191_p6, %p1190_p7 }
  0x5f   : > { %p1193_p12 = pnand %p1192_p9, %p1186_p1 }
  0x61   : > { %1196 = shalt.err (!%p1193_p12)
}
  0x62   : > { %s1197_s12 = scalar_lea.vmem %s1555_s18, 512  ;;  %s1348_s0 = smov [#allocation7]  }
  0x63   : > { %p1198_p0 = scmp.ne.s32.totalorder %s1555_s18, %s1197_s12  ;;  %s1202_s28 = sshll.u32 %s1348_s0, 4  ;;  %s1203_s28 = int_to_ptr.vmem [resolvable:$false] %s1202_s28 }
  0x64   : > { %s1204_s14 = scalar_lea.vmem %s1203_s28, 1024  ;;  %p1205_p11 = scmp.lt.s32.totalorder %s1555_s18, %s1203_s28 }
  0x65   : > { %p1200_p8 = pnand %p1198_p0, %p1476_p2  ;;  %p1206_p4 = scmp.lt.s32.totalorder %s1204_s14, %s1197_s12 }
  0x67   : > { %p1201_p10 = pneg %p1200_p8  ;;  %p1207_p3 = por %p1206_p4, %p1205_p11 }
  0x69   : > { %p1208_p5 = pnand %p1207_p3, %p1201_p10 }
  0x6b   : > { %1211 = shalt.err (!%p1208_p5)
}
  0x6c   : > { %1063 = dma.hbm_to_vmem [thread:$0]  (!%p1455_p13), %s1552_s17, 512, %s1555_s18, %s1470_s20, %s2066_s10, %s2066_s10, %s2065_s30  }
  0x6d   : > { %p2067_p2 = scmp.ne.s32.totalorder %s2063_s16, 0 }
  0x6e   : > { %s1585_s29 = sand.u32 (!%p2067_p2), 1, %s1334_s22   ;;  %p2068_p1 = scmp.ne.s32.totalorder (!%p2067_p2), %s2055_s7, 0 }
  0x6f   : > { %294 = sbr.rel (%p2067_p2) target bundleno = 602 (0x25a), region = 32  ;;  %s1588_s26 = sshll.u32 (!%p2067_p2), %s1585_s29, 5 }
  0x70   : > { %s297_s13 = scalar_lea.sflag (!%p2067_p2), [#allocation3], %s1585_s29  ;;  %s300_s27 = scalar_lea.vmem (!%p2067_p2), [#allocation2], %s1588_s26 }
  0x76   : > { %1313 = dma.done.wait (%p2068_p1), %s297_s13, 512  }
  0x77   : > { %1315 = vsyncadd (%p2068_p1), %s297_s13, 4294966784  ;;  %s305_s20 = sand.u32 1, %s1412_s25   ;;  %s1600_s30 = scalar_lea.vmem [#allocation5], %s1588_s26 }
  0x78   : > { %s306_s16 = scalar_lea.sflag [#allocation6], %s305_s20 }
  0x79   : > { %1317 = dma.done.wait (%p2068_p1), %s306_s16, 1024  }
  0x7a   : > { %1319 = vsyncadd (%p2068_p1), %s306_s16, 4294966272  ;;  %v385_v0 = vlaneseq  ;;  %v374_v2 = vld [vmem:[%s300_s27 + $0x8] sm:$0xff]  ;;  %v373_v3 = vld [vmem:[%s300_s27] sm:$0xff]  ;;  %s1349_s10 = smov 1   ;;  %s1350_s7 = smov 127  }
  0x7b   : > { %442 = vrot.lane.b32.xlu1 %v374_v2, %s1349_s10  ;;  %440 = vrot.lane.b32.xlu0 %v373_v3, %s1349_s10  ;;  %v402_v4 = vrot.slane %v373_v3, 7  ;;  %v375_v5 = vld [vmem:[%s300_s27 + $0x10] sm:$0xff]  ;;  %v376_v6 = vld [vmem:[%s300_s27 + $0x18] sm:$0xff]  ;;  %v423_v10 = vrot.slane %v373_v3, 1  ;;  %v415_v14 = vmul.f32 2.0, %v373_v3  ;;  %v424_v17 = vrot.slane %v374_v2, 1 }
  0x7c   : > { %v1606_v1 = vshrl.u32 %v385_v0, 7  ;;  %v404_v7 = vrot.slane %v375_v5, 7  ;;  %v405_v8 = vrot.slane %v376_v6, 7  ;;  %v426_v11 = vrot.slane %v376_v6, 1  ;;  %s1815_s17 = scalar_lea.vmem [#allocation7], %s1588_s26  ;;  %s1826_s18 = scalar_lea.vmem [#allocation9], %s1588_s26 }
  0x7d   : > { %v418_v13 = vmul.f32 2.0, %v376_v6  ;;  %v403_v23 = vrot.slane %v374_v2, 7  ;;  %v416_v26 = vmul.f32 2.0, %v374_v2  ;;  %v425_v28 = vrot.slane %v375_v5, 1  ;;  %s1832_s1 = scalar_lea.vmem [#allocation11], %s1588_s26  ;;  %s1887_s15 = scalar_lea.vmem [#allocation8], %s1588_s26 }
  0x7e   : > { %vm406_vm0 = vcmp.lt.s32.totalorder %v1606_v1, 1  ;;  %v1612_v9 = vadd.s32 24, %v1606_v1  ;;  %vm392_vm1 = vcmp.gt.s32.totalorder %v1606_v1, 0  ;;  %vm427_vm2 = vcmp.lt.s32.totalorder %v1606_v1, 7  ;;  %s794_s19 = sshll.u32 %s1826_s18, 4  ;;  %s810_s11 = sshll.u32 %s1832_s1, 4  ;;  %s1901_s19 = int_to_ptr.vmem [resolvable:$true] %s794_s19  ;;  %s1903_s11 = int_to_ptr.vmem [resolvable:$true] %s810_s11 }
  0x7f   : > { %v410_v12 = vsel %vm406_vm0, %v405_v8, %v402_v4  ;;  %444 = vrot.lane.b32.xlu1 %v375_v5, %s1349_s10  ;;  %446 = vrot.lane.b32.xlu0 %v376_v6, %s1349_s10  ;;  %v407_v15 = vsel %vm406_vm0, %v404_v7, %v405_v8  ;;  %v431_v18 = vsel %vm427_vm2, %v426_v11, %v423_v10  ;;  %v417_v30 = vmul.f32 2.0, %v375_v5  ;;  %s778_s12 = sshll.u32 %s1887_s15, 4  ;;  %s1908_s0 = sshll.u32 %s1412_s25, 9  ;;  %s1905_s12 = int_to_ptr.vmem [resolvable:$true] %s778_s12 }
  0x80   : > { %v411_v16 = vsel %vm392_vm1, %v410_v12, 0.0  ;;  %vm399_vm3 = vcmp.lt.s32.totalorder %v1612_v9, 31  ;;  %v422_v19 = vadd.f32 %v418_v13, %v407_v15  ;;  %v430_v22 = vsel %vm427_vm2, %v423_v10, %v424_v17  ;;  %s1914_s26 = scalar_lea.hbm %s2039_s5, %s1908_s0  ;;  %s1920_s16 = scalar_lea.hbm %s2040_s6, %s1908_s0 }
  0x81   : > { %v419_v20 = vadd.f32 %v415_v14, %v411_v16  ;;  %v435_v21 = vsel %vm399_vm3, %v431_v18, 0.0  ;;  %v409_v27 = vsel %vm406_vm0, %v402_v4, %v403_v23  ;;  %v429_v31 = vsel %vm427_vm2, %v424_v17, %v425_v28  ;;  %p2069_p7 = scmp.ne.s32.totalorder %s2056_s8, 0 }
  0x82   : > { %v439_v24 = vadd.f32 %v435_v21, %v422_v19  ;;  %v420_v29 = vadd.f32 %v416_v26, %v409_v27  ;;  %v408_v32 = vsel %vm406_vm0, %v403_v23, %v404_v7  ;;  %v428_v35 = vsel %vm427_vm2, %v425_v28, %v426_v11 }
  0x83   : > { %462 = vrot.lane.b32.xlu1 %v376_v6, %s1350_s7  ;;  %456 = vrot.lane.b32.xlu0 %v373_v3, %s1350_s7  ;;  %v436_v25 = vadd.f32 %v430_v22, %v419_v20  ;;  %v421_v34 = vadd.f32 %v417_v30, %v408_v32  ;;  %v1651_v37 = vand.u32 127, %v385_v0 }
  0x84   : > { %v437_v33 = vadd.f32 %v429_v31, %v420_v29 }
  0x85   : > { %v438_v36 = vadd.f32 %v428_v35, %v421_v34  ;;  %vm400_vm4 = vcmp.gt.s32.totalorder %v1651_v37, 0  ;;  %vm401_vm5 = vcmp.lt.s32.totalorder %v1651_v37, 127 }
  0x87   : > { %460 = vrot.lane.b32.xlu1 %v375_v5, %s1350_s7  ;;  %458 = vrot.lane.b32.xlu0 %v374_v2, %s1350_s7 }
  0x8b   : > { %478 = vrot.lane.b32.xlu1 %v439_v24, %s1349_s10  ;;  %472 = vrot.lane.b32.xlu0 %v436_v25, %s1349_s10 }
  0x8f   : > { %490 = vrot.lane.b32.xlu1 %v439_v24, %s1350_s7  ;;  %484 = vrot.lane.b32.xlu0 %v436_v25, %s1350_s7 }
  0x93   : > { %486 = vrot.lane.b32.xlu1 %v437_v33, %s1350_s7  ;;  %474 = vrot.lane.b32.xlu0 %v437_v33, %s1349_s10 }
  0x97   : > { %488 = vrot.lane.b32.xlu1 %v438_v36, %s1350_s7  ;;  %476 = vrot.lane.b32.xlu0 %v438_v36, %s1349_s10 }
  0xed   : > { %v443_v38 = vpop.permute.xlu1 %442  ;;  %v441_v39 = vpop.permute.xlu0 %440 }
  0xee   : > { %v448_v42 = vsel %vm400_vm4, %v441_v39, 0.0  ;;  %v449_v48 = vsel %vm400_vm4, %v443_v38, 0.0 }
  0xef   : > { %v452_v44 = vadd.f32 %v448_v42, %v415_v14  ;;  %v453_v54 = vadd.f32 %v449_v48, %v416_v26 }
  0xf1   : > { %v445_v40 = vpop.permute.xlu1 %444  ;;  %v447_v41 = vpop.permute.xlu0 %446 }
  0xf2   : > { %v451_v43 = vsel %vm400_vm4, %v447_v41, 0.0  ;;  %v450_v49 = vsel %vm400_vm4, %v445_v40, 0.0 }
  0xf3   : > { %v455_v45 = vadd.f32 %v451_v43, %v418_v13  ;;  %v454_v55 = vadd.f32 %v450_v49, %v417_v30 }
  0xf5   : > { %v463_v46 = vpop.permute.xlu1 %462  ;;  %v457_v47 = vpop.permute.xlu0 %456 }
  0xf6   : > { %v467_v50 = vsel %vm401_vm5, %v463_v46, 0.0  ;;  %v464_v51 = vsel %vm401_vm5, %v457_v47, 0.0 }
  0xf7   : > { %v471_v52 = vadd.f32 %v467_v50, %v455_v45  ;;  %v468_v53 = vadd.f32 %v464_v51, %v452_v44 }
  0xf9   : > { %v503_v56 = vrot.slane %v471_v52, 1  ;;  %v500_v57 = vrot.slane %v468_v53, 1  ;;  %v461_v58 = vpop.permute.xlu1 %460  ;;  %v459_v59 = vpop.permute.xlu0 %458  ;;  %v515_v0 = vrot.slane %v471_v52, 7  ;;  %v512_v10 = vrot.slane %v468_v53, 7 }
  0xfa   : > { %v466_v60 = vsel %vm401_vm5, %v461_v58, 0.0  ;;  %v465_v61 = vsel %vm401_vm5, %v459_v59, 0.0 }
  0xfb   : > { %v470_v62 = vadd.f32 %v466_v60, %v454_v55  ;;  %v469_v63 = vadd.f32 %v465_v61, %v453_v54  ;;  %v507_v2 = vsel %vm427_vm2, %v503_v56, %v500_v57  ;;  %v519_v46 = vsel %vm406_vm0, %v515_v0, %v512_v10 }
  0xfc   : > { %v511_v11 = vsel %vm399_vm3, %v507_v2, 0.0  ;;  %v520_v53 = vsel %vm392_vm1, %v519_v46, 0.0  ;;  %v379_v46 = vld [vmem:[%s1600_s30 + $0x10] sm:$0xff] }
  0xfd   : > { %v502_v3 = vrot.slane %v470_v62, 1  ;;  %v514_v4 = vrot.slane %v470_v62, 7  ;;  %v501_v5 = vrot.slane %v469_v63, 1  ;;  %v513_v6 = vrot.slane %v469_v63, 7  ;;  %v479_v7 = vpop.permute.xlu1 %478  ;;  %v473_v8 = vpop.permute.xlu0 %472 }
  0xfe   : > { %v483_v35 = vsel %vm400_vm4, %v479_v7, 0.0  ;;  %v480_v40 = vsel %vm400_vm4, %v473_v8, 0.0 }
  0xff   : > { %v504_v12 = vsel %vm427_vm2, %v502_v3, %v503_v56  ;;  %v516_v13 = vsel %vm406_vm0, %v514_v4, %v515_v0  ;;  %v505_v14 = vsel %vm427_vm2, %v501_v5, %v502_v3  ;;  %v517_v16 = vsel %vm406_vm0, %v513_v6, %v514_v4 }
 0x100   : > { %v1681_v15 = vsub.f32 %v511_v11, %v516_v13  ;;  %v518_v17 = vsel %vm406_vm0, %v512_v10, %v513_v6  ;;  %v1689_v19 = vsub.f32 %v504_v12, %v517_v16  ;;  %v506_v48 = vsel %vm427_vm2, %v500_v57, %v501_v5 }
 0x101   : > { %v1687_v18 = vsub.f32 %v505_v14, %v518_v17  ;;  %v491_v20 = vpop.permute.xlu1 %490  ;;  %v485_v21 = vpop.permute.xlu0 %484  ;;  %v524_v56 = vsub.f32 %v506_v48, %v520_v53 }
 0x102   : > { %v598_v23 = vrot.slane %v1689_v19, 7  ;;  %v615_v24 = vrot.slane %v1681_v15, 1  ;;  %v614_v25 = vrot.slane %v1689_v19, 1  ;;  %v495_v30 = vsel %vm401_vm5, %v491_v20, 0.0 }
 0x103   : > { %v597_v22 = vrot.slane %v1687_v18, 7  ;;  %v492_v33 = vsel %vm401_vm5, %v485_v21, 0.0  ;;  %v499_v41 = vsub.f32 %v483_v35, %v495_v30  ;;  %v599_v0 = vrot.slane %v1681_v15, 7 }
 0x104   : > { %v616_v34 = vsel %vm427_vm2, %v614_v25, %v615_v24  ;;  %v496_v44 = vsub.f32 %v480_v40, %v492_v33  ;;  %v596_v2 = vrot.slane %v524_v56, 7  ;;  %v612_v4 = vrot.slane %v524_v56, 1  ;;  %v383_v40 = vld [vmem:[%s1815_s17 + $0x10] sm:$0xff] }
 0x105   : > { %v601_v26 = vsel %vm406_vm0, %v597_v22, %v598_v23  ;;  %v487_v27 = vpop.permute.xlu1 %486  ;;  %v475_v28 = vpop.permute.xlu0 %474  ;;  %v531_v49 = vrot.slane %v499_v41, 7  ;;  %v547_v54 = vrot.slane %v499_v41, 1  ;;  %v600_v12 = vsel %vm406_vm0, %v598_v23, %v599_v0 }
 0x106   : > { %v610_v29 = vadd.f32 %v601_v26, %v1689_v19  ;;  %v493_v31 = vsel %vm401_vm5, %v487_v27, 0.0  ;;  %v481_v32 = vsel %vm400_vm4, %v475_v28, 0.0  ;;  %v544_v55 = vrot.slane %v496_v44, 1 }
 0x107   : > { %v497_v42 = vsub.f32 %v481_v32, %v493_v31  ;;  %v528_v3 = vrot.slane %v496_v44, 7  ;;  %v602_v10 = vsel %vm406_vm0, %v596_v2, %v597_v22  ;;  %v619_v16 = vsel %vm427_vm2, %v615_v24, %v612_v4 }
 0x108   : > { %v1712_v36 = vadd.f32 %v616_v34, %v610_v29  ;;  %v551_v61 = vsel %vm427_vm2, %v547_v54, %v544_v55  ;;  %v613_v17 = vrot.slane %v1687_v18, 1  ;;  %v609_v20 = vadd.f32 %v602_v10, %v1687_v18 }
 0x109   : > { %v489_v38 = vpop.permute.xlu1 %488  ;;  %v477_v39 = vpop.permute.xlu0 %476  ;;  %v529_v50 = vrot.slane %v497_v42, 7  ;;  %v545_v6 = vrot.slane %v497_v42, 1  ;;  %v555_v7 = vsel %vm399_vm3, %v551_v61, %v499_v41  ;;  %v535_v13 = vsel %vm406_vm0, %v531_v49, %v528_v3 }
 0x10a   : > { %v494_v43 = vsel %vm401_vm5, %v489_v38, 0.0  ;;  %632 = vrot.lane.b32.xlu1 %v1712_v36, %s1349_s10  ;;  %v482_v45 = vsel %vm400_vm4, %v477_v39, 0.0  ;;  %v611_v22 = vadd.f32 %v600_v12, %v1681_v15  ;;  %v536_v23 = vsel %vm392_vm1, %v535_v13, %v496_v44  ;;  %v378_v12 = vld [vmem:[%s1600_s30 + $0x8] sm:$0xff] }
 0x10b   : > { %v498_v47 = vsub.f32 %v482_v45, %v494_v43  ;;  %v534_v5 = vsel %vm406_vm0, %v528_v3, %v529_v50  ;;  %v623_v26 = vsel %vm399_vm3, %v619_v16, %v1681_v15  ;;  %v603_v24 = vsel %vm406_vm0, %v599_v0, %v596_v2  ;;  %v382_v3 = vld [vmem:[%s1815_s17 + $0x8] sm:$0xff] }
 0x10c   : > { %v541_v14 = vadd.f32 %v534_v5, %v497_v42  ;;  %v617_v18 = vsel %vm427_vm2, %v613_v17, %v614_v25  ;;  %v540_v27 = vadd.f32 %v536_v23, %v496_v44  ;;  %v1777_v29 = vadd.f32 %v623_v26, %v611_v22  ;;  %v381_v26 = vld [vmem:[%s1815_s17] sm:$0xff] }
 0x10d   : > { %v530_v51 = vrot.slane %v498_v47, 7  ;;  %v546_v52 = vrot.slane %v498_v47, 1  ;;  %v1775_v28 = vadd.f32 %v617_v18, %v609_v20  ;;  %v550_v9 = vsel %vm427_vm2, %v544_v55, %v545_v6 }
 0x10e   : > { %v604_v15 = vsel %vm392_vm1, %v603_v24, %v524_v56  ;;  %v1787_v19 = vadd.f32 %v550_v9, %v540_v27  ;;  %v618_v30 = vsel %vm427_vm2, %v612_v4, %v613_v17  ;;  %v681_v16 = vmul.f32 %v382_v3, %v382_v3 }
 0x10f   : > { %v532_v58 = vsel %vm406_vm0, %v530_v51, %v531_v49  ;;  %v533_v59 = vsel %vm406_vm0, %v529_v50, %v530_v51  ;;  %v548_v57 = vsel %vm427_vm2, %v546_v52, %v547_v54  ;;  %v549_v11 = vsel %vm427_vm2, %v545_v6, %v546_v52 }
 0x110   : > { %v542_v60 = vadd.f32 %v533_v59, %v498_v47  ;;  %v543_v62 = vadd.f32 %v532_v58, %v499_v41  ;;  %v557_v21 = vadd.f32 %v549_v11, %v541_v14  ;;  %v608_v25 = vadd.f32 %v604_v15, %v524_v56 }
 0x111   : > { %v678_v49 = vmul.f32 %v379_v46, %v379_v46  ;;  %v682_v50 = vmul.f32 %v383_v40, %v383_v40  ;;  %v677_v14 = vmul.f32 %v378_v12, %v378_v12 }
 0x112   : > { %v558_v63 = vadd.f32 %v548_v57, %v542_v60  ;;  %v1743_v8 = vadd.f32 %v555_v7, %v543_v62  ;;  %v1795_v31 = vadd.f32 %v618_v30, %v608_v25 }
 0x113   : > { %v686_v58 = vadd.f32 %v682_v50, %v678_v49  ;;  %v685_v30 = vadd.f32 %v681_v16, %v677_v14  ;;  %v380_v50 = vld [vmem:[%s1600_s30 + $0x18] sm:$0xff] }
 0x114   : > { %580 = vrot.lane.b32.xlu1 %v558_v63, %s1350_s7  ;;  %564 = vrot.lane.b32.xlu0 %v558_v63, %s1349_s10 }
 0x118   : > { %648 = vrot.lane.b32.xlu1 %v1712_v36, %s1350_s7  ;;  %566 = vrot.lane.b32.xlu0 %v1743_v8, %s1349_s10 }
 0x11c   : > { %562 = vrot.lane.b32.xlu1 %v557_v21, %s1349_s10  ;;  %578 = vrot.lane.b32.xlu0 %v557_v21, %s1350_s7 }
 0x120   : > { %630 = vrot.lane.b32.xlu1 %v1775_v28, %s1349_s10  ;;  %634 = vrot.lane.b32.xlu0 %v1777_v29, %s1349_s10 }
 0x124   : > { %646 = vrot.lane.b32.xlu1 %v1775_v28, %s1350_s7  ;;  %560 = vrot.lane.b32.xlu0 %v1787_v19, %s1349_s10 }
 0x128   : > { %576 = vrot.lane.b32.xlu1 %v1787_v19, %s1350_s7  ;;  %628 = vrot.lane.b32.xlu0 %v1795_v31, %s1349_s10  ;;  %s1212_s10 = scalar_lea.vmem %s1901_s19, 512 }
 0x129   : > { %p1213_p13 = scmp.ne.s32.totalorder %s1901_s19, %s1212_s10 }
 0x12b   : > { %p1214_p6 = pnand %p1213_p13, %p2069_p7 }
 0x12c   : > { %650 = vrot.lane.b32.xlu1 %v1777_v29, %s1350_s7  ;;  %644 = vrot.lane.b32.xlu0 %v1795_v31, %s1350_s7 }
 0x12d   : > { %p1215_p9 = pneg %p1214_p6 }
 0x130   : > { %582 = vrot.lane.b32.xlu0 %v1743_v8, %s1350_s7  ;;  %s1351_s7 = smov [#allocation9]  }
 0x17c   : > { %v633_v1 = vpop.permute.xlu1 %632 }
 0x17d   : > { %v638_v34 = vsel %vm400_vm4, %v633_v1, %v1712_v36  ;;  %v377_v1 = vld [vmem:[%s1600_s30] sm:$0xff]  ;;  %s1924_s30 = scalar_lea.sflag [#allocation10], %s305_s20 }
 0x17e   : > { %v642_v41 = vadd.f32 %v638_v34, %v1712_v36 }
 0x186   : > { %v581_v32 = vpop.permute.xlu1 %580  ;;  %v565_v33 = vpop.permute.xlu0 %564 }
 0x187   : > { %v570_v35 = vsel %vm400_vm4, %v565_v33, %v558_v63  ;;  %v586_v39 = vsel %vm401_vm5, %v581_v32, %v558_v63  ;;  %v676_v32 = vmul.f32 %v377_v1, %v377_v1  ;;  %v680_v33 = vmul.f32 %v381_v26, %v381_v26 }
 0x188   : > { %v574_v38 = vadd.f32 %v570_v35, %v558_v63 }
 0x18a   : > { %v590_v42 = vadd.f32 %v586_v39, %v574_v38  ;;  %v649_v43 = vpop.permute.xlu1 %648  ;;  %v1819_v44 = vpop.permute.xlu0 %566 }
 0x18b   : > { %v654_v45 = vsel %vm401_vm5, %v649_v43, %v1712_v36 }
 0x18c   : > { %v594_v47 = vmul.f32 0.11111111, %v590_v42  ;;  %v658_v48 = vadd.f32 %v654_v45, %v642_v41  ;;  %v571_v41 = vsel %vm400_vm4, %v1819_v44, %v1743_v8 }
 0x18d   : > { %v575_v44 = vadd.f32 %v571_v41, %v1743_v8 }
 0x18e   : > { %722 = vst [vmem:[%s1826_s18 + $0x10] sm:$0xff] %v594_v47  ;;  %v662_v51 = vmul.f32 0.11111111, %v658_v48  ;;  %v563_v52 = vpop.permute.xlu1 %562  ;;  %v579_v53 = vpop.permute.xlu0 %578  ;;  %v666_v55 = vmul.f32 %v594_v47, %v594_v47  ;;  %v698_v17 = vmul.f32 %v594_v47, %v379_v46 }
 0x18f   : > { %v569_v54 = vsel %vm400_vm4, %v563_v52, %v557_v21  ;;  %v585_v59 = vsel %vm401_vm5, %v579_v53, %v557_v21 }
 0x190   : > { %v670_v56 = vmul.f32 %v662_v51, %v662_v51  ;;  %726 = vst [vmem:[%s1832_s1 + $0x10] sm:$0xff] %v662_v51  ;;  %v573_v36 = vadd.f32 %v569_v54, %v557_v21  ;;  %v702_v11 = vmul.f32 %v662_v51, %v383_v40 }
 0x192   : > { %v674_v60 = vadd.f32 %v670_v56, %v666_v55  ;;  %v589_v57 = vadd.f32 %v585_v59, %v573_v36  ;;  %v631_v61 = vpop.permute.xlu1 %630  ;;  %v635_v62 = vpop.permute.xlu0 %634  ;;  %v684_v55 = vadd.f32 %v680_v33, %v676_v32  ;;  %v384_v56 = vld [vmem:[%s1815_s17 + $0x18] sm:$0xff]  ;;  %v679_v36 = vmul.f32 %v380_v50, %v380_v50  ;;  %s1216_s17 = sshll.u32 %s1351_s7, 4  ;;  %s1217_s17 = int_to_ptr.vmem [resolvable:$false] %s1216_s17 }
 0x193   : > { %v637_v63 = vsel %vm400_vm4, %v631_v61, %v1775_v28  ;;  %v639_v24 = vsel %vm400_vm4, %v635_v62, %v1777_v29  ;;  %p1219_p12 = scmp.lt.s32.totalorder %s1901_s19, %s1217_s17 }
 0x194   : > { %v1840_v0 = vmul.f32 0.11111111, %v589_v57  ;;  %v690_v2 = vmul.f32 %v686_v58, %v674_v60  ;;  %v641_v4 = vadd.f32 %v637_v63, %v1775_v28  ;;  %v643_v34 = vadd.f32 %v639_v24, %v1777_v29 }
 0x195   : > { %v683_v57 = vmul.f32 %v384_v56, %v384_v56 }
 0x196   : > { %721 = vst [vmem:[%s1826_s18 + $0x8] sm:$0xff] %v1840_v0  ;;  %v647_v5 = vpop.permute.xlu1 %646  ;;  %v561_v6 = vpop.permute.xlu0 %560  ;;  %1114 = vrsqrt.f32 %v690_v2  ;;  %v665_v9 = vmul.f32 %v1840_v0, %v1840_v0  ;;  %v697_v61 = vmul.f32 %v1840_v0, %v378_v12 }
 0x197   : > { %v653_v7 = vsel %vm401_vm5, %v647_v5, %v1775_v28  ;;  %v568_v10 = vsel %vm400_vm4, %v561_v6, %v1787_v19  ;;  %v706_v28 = vadd.f32 %v702_v11, %v698_v17 }
 0x198   : > { %v657_v13 = vadd.f32 %v653_v7, %v641_v4  ;;  %v572_v21 = vadd.f32 %v568_v10, %v1787_v19  ;;  %v687_v4 = vadd.f32 %v683_v57, %v679_v36 }
 0x199   : > { %v710_v45 = vand.u32 2147483647, %v706_v28 }
 0x19a   : > { %v661_v20 = vmul.f32 0.11111111, %v657_v13  ;;  %v577_v22 = vpop.permute.xlu1 %576  ;;  %v629_v23 = vpop.permute.xlu0 %628 }
 0x19b   : > { %v584_v18 = vsel %vm401_vm5, %v577_v22, %v1787_v19  ;;  %v636_v27 = vsel %vm400_vm4, %v629_v23, %v1795_v31 }
 0x19c   : > { %v669_v15 = vmul.f32 %v661_v20, %v661_v20  ;;  %725 = vst [vmem:[%s1832_s1 + $0x8] sm:$0xff] %v661_v20  ;;  %v588_v25 = vadd.f32 %v584_v18, %v572_v21  ;;  %v640_v38 = vadd.f32 %v636_v27, %v1795_v31  ;;  %v701_v54 = vmul.f32 %v661_v20, %v382_v3 }
 0x19e   : > { %v673_v19 = vadd.f32 %v669_v15, %v665_v9  ;;  %v592_v35 = vmul.f32 0.11111111, %v588_v25  ;;  %v651_v39 = vpop.permute.xlu1 %650  ;;  %v645_v40 = vpop.permute.xlu0 %644  ;;  %v705_v62 = vadd.f32 %v701_v54, %v697_v61 }
 0x19f   : > { %v655_v42 = vsel %vm401_vm5, %v651_v39, %v1777_v29  ;;  %v652_v43 = vsel %vm401_vm5, %v645_v40, %v1795_v31 }
 0x1a0   : > { %v1115_v46 = vpop.eup %1114  ;;  %720 = vst [vmem:[%s1826_s18] sm:$0xff] %v592_v35  ;;  %v659_v47 = vadd.f32 %v655_v42, %v643_v34  ;;  %v656_v48 = vadd.f32 %v652_v43, %v640_v38  ;;  %v689_v49 = vmul.f32 %v685_v30, %v673_v19  ;;  %v664_v58 = vmul.f32 %v592_v35, %v592_v35 }
 0x1a1   : > { %v714_v51 = vmul.f32 %v1115_v46, %v710_v45  ;;  %v709_v6 = vand.u32 2147483647, %v705_v62  ;;  %v696_v14 = vmul.f32 %v592_v35, %v377_v1 }
 0x1a2   : > { %v663_v52 = vmul.f32 0.11111111, %v659_v47  ;;  %v660_v29 = vmul.f32 0.11111111, %v656_v48  ;;  %v583_v53 = vpop.permute.xlu0 %582  ;;  %1116 = vrsqrt.f32 %v689_v49 }
 0x1a3   : > { %v587_v31 = vsel %vm401_vm5, %v583_v53, %v1743_v8  ;;  %718 = vst [vmem:[%s1887_s15 + $0x10] sm:$0xff] %v714_v51  ;;  %732 = vadd.xlane.f32.xlu0 %v714_v51 }
 0x1a4   : > { %727 = vst [vmem:[%s1832_s1 + $0x18] sm:$0xff] %v663_v52  ;;  %v668_v59 = vmul.f32 %v660_v29, %v660_v29  ;;  %724 = vst [vmem:[%s1832_s1] sm:$0xff] %v660_v29  ;;  %v591_v60 = vadd.f32 %v587_v31, %v575_v44  ;;  %v671_v63 = vmul.f32 %v663_v52, %v663_v52 }
 0x1a5   : > { %v700_v7 = vmul.f32 %v660_v29, %v381_v26  ;;  %v703_v16 = vmul.f32 %v663_v52, %v384_v56 }
 0x1a6   : > { %v672_v37 = vadd.f32 %v668_v59, %v664_v58  ;;  %v595_v8 = vmul.f32 0.11111111, %v591_v60 }
 0x1a7   : > { %v704_v0 = vadd.f32 %v700_v7, %v696_v14 }
 0x1a8   : > { %v667_v2 = vmul.f32 %v595_v8, %v595_v8  ;;  %723 = vst [vmem:[%s1826_s18 + $0x18] sm:$0xff] %v595_v8  ;;  %v688_v3 = vmul.f32 %v684_v55, %v672_v37  ;;  %v699_v12 = vmul.f32 %v595_v8, %v380_v50  ;;  %s1218_s18 = scalar_lea.vmem %s1217_s17, 1024 }
 0x1a9   : > { %v708_v17 = vand.u32 2147483647, %v704_v0  ;;  %p1220_p0 = scmp.lt.s32.totalorder %s1218_s18, %s1212_s10 }
 0x1aa   : > { %v675_v5 = vadd.f32 %v671_v63, %v667_v2  ;;  %1118 = vrsqrt.f32 %v688_v3  ;;  %v707_v20 = vadd.f32 %v703_v16, %v699_v12 }
 0x1ab   : > { %p1221_p8 = por %p1220_p0, %p1219_p12 }
 0x1ac   : > { %v1117_v10 = vpop.eup %1116  ;;  %v691_v11 = vmul.f32 %v687_v4, %v675_v5  ;;  %v711_v23 = vand.u32 2147483647, %v707_v20 }
 0x1ad   : > { %v713_v13 = vmul.f32 %v1117_v10, %v709_v6  ;;  %p1222_p10 = pnand %p1221_p8, %p1215_p9 }
 0x1ae   : > { %1120 = vrsqrt.f32 %v691_v11 }
 0x1af   : > { %730 = vadd.xlane.f32.xlu1 %v713_v13  ;;  %717 = vst [vmem:[%s1887_s15 + $0x8] sm:$0xff] %v713_v13 }
 0x1b4   : > { %v1119_v21 = vpop.eup %1118 }
 0x1b5   : > { %v712_v22 = vmul.f32 %v1119_v21, %v708_v17 }
 0x1b7   : > { %728 = vadd.xlane.f32.xlu0 %v712_v22  ;;  %716 = vst [vmem:[%s1887_s15] sm:$0xff] %v712_v22 }
 0x1b8   : > { %v1121_v26 = vpop.eup %1120 }
 0x1b9   : > { %v715_v24 = vmul.f32 %v1121_v26, %v711_v23 }
 0x1bb   : > { %734 = vadd.xlane.f32.xlu0 %v715_v24  ;;  %719 = vst [vmem:[%s1887_s15 + $0x18] sm:$0xff] %v715_v24 }
 0x1bc   : > { %1225 = shalt.err (!%p1222_p10)
}
 0x1bd   : > { %s1226_s20 = scalar_lea.hbm %s1914_s26, 512  ;;  %s1230_s28 = scalar_lea.hbm %s2039_s5, 1024 }
 0x1be   : > { %p1227_p11 = scmp.ne.s32.totalorder %s1914_s26, %s1226_s20  ;;  %p1231_p5 = scmp.lt.u32.totalorder %s1914_s26, %s2039_s5 }
 0x1bf   : > { %p1232_p2 = scmp.lt.u32.totalorder %s1230_s28, %s1226_s20  ;;  %p1234_p13 = scmp.lt.u32.totalorder %s1226_s20, %s1914_s26 }
 0x1c0   : > { %p1228_p4 = pnand %p1227_p11, %p2069_p7 }
 0x1c1   : > { %p1233_p1 = por %p1232_p2, %p1231_p5 }
 0x1c2   : > { %p1229_p3 = pneg %p1228_p4 }
 0x1c3   : > { %p1235_p6 = por %p1234_p13, %p1233_p1 }
 0x1c5   : > { %p1236_p9 = pnand %p1235_p6, %p1229_p3 }
 0x1c7   : > { %1239 = shalt.err (!%p1236_p9)
}
 0x1c8   : > { %s1352_s27 = smov 128   ;;  %s1353_s10 = smov 8  }
 0x1c9   : > { %1049 = dma.vmem_to_hbm [thread:$0]  (%p2069_p7), %s1901_s19, 512, %s1914_s26, %s1924_s30, %s1352_s27, %s1352_s27, %s1353_s10  }
 0x1ca   : > { %s1955_s18 = scalar_lea.hbm %s2038_s4, %s1908_s0  ;;  %s752_s20 = scalar_lea.sflag [#allocation4], %s1585_s29 }
 0x1cb   : > { %s1240_s1 = scalar_lea.vmem %s1905_s12, 512  ;;  %s1354_s15 = smov [#allocation8]  }
 0x1cc   : > { %p1241_p12 = scmp.ne.s32.totalorder %s1905_s12, %s1240_s1  ;;  %s1244_s28 = sshll.u32 %s1354_s15, 4  ;;  %s1245_s28 = int_to_ptr.vmem [resolvable:$false] %s1244_s28 }
 0x1cd   : > { %s1246_s14 = scalar_lea.vmem %s1245_s28, 1024  ;;  %p1247_p10 = scmp.lt.s32.totalorder %s1905_s12, %s1245_s28 }
 0x1ce   : > { %p1242_p0 = pnand %p1241_p12, %p2069_p7  ;;  %p1248_p11 = scmp.lt.s32.totalorder %s1246_s14, %s1240_s1 }
 0x1d0   : > { %p1243_p8 = pneg %p1242_p0  ;;  %p1249_p4 = por %p1248_p11, %p1247_p10 }
 0x1d2   : > { %p1250_p3 = pnand %p1249_p4, %p1243_p8 }
 0x1d4   : > { %1253 = shalt.err (!%p1250_p3)
}
 0x1d5   : > { %s1254_s19 = scalar_lea.hbm %s1955_s18, 512  ;;  %s1258_s13 = scalar_lea.hbm %s2038_s4, 1024 }
 0x1d6   : > { %p1255_p5 = scmp.ne.s32.totalorder %s1955_s18, %s1254_s19  ;;  %p1259_p13 = scmp.lt.u32.totalorder %s1955_s18, %s2038_s4 }
 0x1d7   : > { %p1260_p6 = scmp.lt.u32.totalorder %s1258_s13, %s1254_s19  ;;  %p1262_p12 = scmp.lt.u32.totalorder %s1254_s19, %s1955_s18 }
 0x1d8   : > { %p1256_p2 = pnand %p1255_p5, %p2069_p7 }
 0x1d9   : > { %p1261_p9 = por %p1260_p6, %p1259_p13 }
 0x1da   : > { %p1257_p1 = pneg %p1256_p2 }
 0x1db   : > { %p1263_p0 = por %p1262_p12, %p1261_p9 }
 0x1dd   : > { %p1264_p8 = pnand %p1263_p0, %p1257_p1 }
 0x1df   : > { %1267 = shalt.err (!%p1264_p8)
}
 0x1e0   : > { %1048 = dma.vmem_to_hbm [thread:$0]  (%p2069_p7), %s1905_s12, 512, %s1955_s18, %s752_s20, %s1352_s27, %s1352_s27, %s1353_s10  }
 0x1e1   : > { %s1268_s1 = scalar_lea.vmem %s1903_s11, 512  ;;  %s1355_s15 = smov [#allocation11]  }
 0x1e2   : > { %p1269_p10 = scmp.ne.s32.totalorder %s1903_s11, %s1268_s1  ;;  %s1272_s28 = sshll.u32 %s1355_s15, 4  ;;  %s1273_s28 = int_to_ptr.vmem [resolvable:$false] %s1272_s28 }
 0x1e3   : > { %s1274_s14 = scalar_lea.vmem %s1273_s28, 1024  ;;  %p1275_p3 = scmp.lt.s32.totalorder %s1903_s11, %s1273_s28 }
 0x1e4   : > { %p1270_p11 = pnand %p1269_p10, %p2069_p7  ;;  %p1276_p5 = scmp.lt.s32.totalorder %s1274_s14, %s1268_s1 }
 0x1e6   : > { %p1271_p4 = pneg %p1270_p11  ;;  %p1277_p2 = por %p1276_p5, %p1275_p3 }
 0x1e8   : > { %p1278_p1 = pnand %p1277_p2, %p1271_p4 }
 0x1ea   : > { %1281 = shalt.err (!%p1278_p1)
}
 0x1eb   : > { %s1282_s29 = scalar_lea.hbm %s1920_s16, 512  ;;  %s1286_s20 = scalar_lea.hbm %s2040_s6, 1024 }
 0x1ec   : > { %p1283_p13 = scmp.ne.s32.totalorder %s1920_s16, %s1282_s29  ;;  %p1287_p12 = scmp.lt.u32.totalorder %s1920_s16, %s2040_s6 }
 0x1ed   : > { %p1288_p0 = scmp.lt.u32.totalorder %s1286_s20, %s1282_s29  ;;  %p1290_p10 = scmp.lt.u32.totalorder %s1282_s29, %s1920_s16 }
 0x1ee   : > { %p1284_p6 = pnand %p1283_p13, %p2069_p7 }
 0x1ef   : > { %p1289_p8 = por %p1288_p0, %p1287_p12 }
 0x1f0   : > { %p1285_p9 = pneg %p1284_p6 }
 0x1f1   : > { %p1291_p11 = por %p1290_p10, %p1289_p8 }
 0x1f3   : > { %p1292_p4 = pnand %p1291_p11, %p1285_p9 }
 0x1f5   : > { %1295 = shalt.err (!%p1292_p4)
}
 0x1f6   : > { %1050 = dma.vmem_to_hbm [thread:$0]  (%p2069_p7), %s1903_s11, 512, %s1920_s16, %s1924_s30, %s1352_s27, %s1352_s27, %s1353_s10   ;;  %vm746_vm6 = vcmask 0  }
 0x1f7   : > { %p370_p3 = scmp.lt.s32.totalorder %s1412_s25, 1 }
 0x1f9   : > { %s2079_s25 = smov (!%p370_p3, %s1412_s25), 1 }
 0x1fa   : > { %s372_s13 = scalar_lea.vmem %s2037_s3, %s2079_s25 }
 0x230   : > { %v733_v18 = vpop.xlane.xlu0 %732 }
 0x23c   : > { %v731_v27 = vpop.xlane.xlu1 %730 }
 0x244   : > { %v729_v28 = vpop.xlane.xlu0 %728 }
 0x245   : > { %v736_v9 = vadd.f32 %v731_v27, %v729_v28 }
 0x247   : > { %v737_v15 = vadd.f32 %v736_v9, %v733_v18 }
 0x248   : > { %v735_v25 = vpop.xlane.xlu0 %734 }
 0x249   : > { %v738_v30 = vadd.f32 %v737_v15, %v735_v25 }
 0x24b   : > { %v739_v1 = vrot.slane %v738_v30, 4 }
 0x24d   : > { %v740_v32 = vadd.f32 %v739_v1, %v738_v30 }
 0x24f   : > { %v741_v33 = vrot.slane %v740_v32, 2 }
 0x251   : > { %v742_v34 = vadd.f32 %v741_v33, %v740_v32 }
 0x253   : > { %v743_v19 = vrot.slane %v742_v34, 1 }
 0x255   : > { %v744_v35 = vadd.f32 %v743_v19, %v742_v34 }
 0x257   : > { %v745_v38 = vmul.f32 0.00024414063, %v744_v35 }
 0x259   : > { %747 = vst.msk [vmem:[%s372_s13] sm:$0x1] %vm746_vm6, %v745_v38 }
 0x25a PF: > { %s831_s11 = sand.u32 1, %s1330_s21   ;;  %p2070_p7 = scmp.ne.s32.totalorder %s2057_s9, 0 }
 0x25b   : > { %p2071_p5 = scmp.ge.s32.totalorder %s1342_s24, 2  ;;  %s832_s16 = scalar_lea.sflag [#allocation4], %s831_s11 }
 0x25d   : > { %p1065_p2 = pnand %p2071_p5, %p2070_p7 }
 0x25f   : > { %1321 = dma.done.wait (!%p1065_p2), %s832_s16, 512  }
 0x260   : > { %1323 = vsyncadd (!%p1065_p2), %s832_s16, 4294966784  ;;  %s2072_s30 = sadd.s32 4294967294, %s1342_s24  }
 0x261   : > { %s840_s27 = sand.u32 1, %s2072_s30  }
 0x262   : > { %s841_s10 = scalar_lea.sflag [#allocation10], %s840_s27 }
 0x263   : > { %1325 = dma.done.wait (!%p1065_p2), %s841_s10, 1024  }
 0x264   : > { %1327 = vsyncadd (!%p1065_p2), %s841_s10, 4294966272  ;;  %s2073_s24 = sld [smem:[#allocation16_spill]]  ;;  %s2074_s25 = sld [smem:[#allocation17_spill]] }
 0x265   : > { %s2075_s21 = smov %s1334_s22  ;;  %s2076_s22 = smov %s1338_s23 }
 0x26a   : > { %p26_p1 = scmp.ge.s32.totalorder %s2073_s24, 4   ;;  %s2077_s23 = smov %s2074_s25 }
 0x26c   :  { %28 = sbr.rel (!%p26_p1) target bundleno = 12 (0xc), region = 145 }
 0x273   :  { %855 = vsyncpa [#allocation3], 1 }
 0x274   :  { %857 = vsyncpa [#allocation3 + $0x1], 1 }
 0x275   :  { %858 = vsyncpa [#allocation6], 1 }
 0x276   :  { %860 = vsyncpa [#allocation6 + $0x1], 1 }
 0x277   :  { %861 = vsyncpa [#allocation4], 1 }
 0x278   :  { %863 = vsyncpa [#allocation4 + $0x1], 1 }
 0x279   :  { %864 = vsyncpa [#allocation10], 1 }
 0x27a   :  { %866 = vsyncpa [#allocation10 + $0x1], 1 }

</bundles_post_ra>
